<compile_context>
chip_gen: v7x
topology: tpu7x:2x2x1
jax: 0.10.0
libtpu: 0.0.40
codegen_flags: <defaults>
</compile_context>

<pallas_src>
import functools

import jax
import jax.numpy as jnp
from jax.experimental import pallas as pl
from jax.experimental.pallas import tpu as pltpu


def _round_up(x, m):
    return ((x + m - 1) // m) * m


def hinge_loss_kernel(out_ref, y_ref, w_ref, partial_ref, *, inv_n_elems, c,
                      tile_b, n_pad):
    # Upcast inside the kernel (inputs may be bf16; the DMA stays narrow).
    x = out_ref[...].astype(jnp.float32)
    t = y_ref[...].astype(jnp.float32)
    hinge = jnp.maximum(1.0 - t * x, 0.0)                     # (TILE_B, N_pad)

    # Fold sublanes into an (8, N_pad) partial: lane-dense output block, no
    # cross-lane reduce in the steady-state loop (done once in the wrapper).
    folded = jnp.sum(hinge.reshape(tile_b // 8, 8, n_pad), axis=0)
    partial_ref[...] = folded * inv_n_elems

    # L2 regularizer c * (w @ w) folded into tile 0's partial block.
    @pl.when(pl.program_id(0) == 0)
    def _():
        w = w_ref[...]                                        # (W_ROWS, 128), f32
        wsq = jnp.sum((w * w).reshape(w.shape[0] // 8, 8, 128), axis=0)
        partial_ref[:, 0:128] = partial_ref[:, 0:128] + c * wsq


def hinge_loss(output, y, weight_vec, c=0.5):
    """output, y: (B, N) model scores and +/-1 labels. weight_vec: 1-D flattened params."""
    B, N = output.shape
    n_elems = B * N

    # Row-tile size: large enough for good HBM pipelining, conservative for v7x VMEM.
    TILE_B = 1024
    if B < TILE_B:
        TILE_B = _round_up(B, 8)
    N_pad = _round_up(N, 128)
    B_pad = _round_up(B, TILE_B)
    num_tiles = B_pad // TILE_B

    # Pad with (output=2, y=1) so padded elements contribute exactly 0 hinge.
    out_p = jnp.full((B_pad, N_pad), 2.0, output.dtype).at[:B, :N].set(output)
    y_p = jnp.full((B_pad, N_pad), 1.0, y.dtype).at[:B, :N].set(y)

    # Flattened parameter vector, zero-padded, sublane+lane dense as (rows, 128).
    n_params = weight_vec.shape[0]
    w_elems = _round_up(max(n_params, 1), 8 * 128)
    w_rows = w_elems // 128
    w_pad = (jnp.zeros((w_elems,), jnp.float32)
             .at[:n_params].set(weight_vec.astype(jnp.float32))
             .reshape(w_rows, 128))

    kernel = functools.partial(
        hinge_loss_kernel,
        inv_n_elems=1.0 / float(n_elems),
        c=float(c),
        tile_b=TILE_B,
        n_pad=N_pad,
    )

    bytes_in = (out_p.size * out_p.dtype.itemsize
                + y_p.size * y_p.dtype.itemsize
                + w_pad.size * 4)
    cost = pl.CostEstimate(
        flops=3 * n_elems + 2 * n_params,
        transcendentals=0,
        bytes_accessed=bytes_in + num_tiles * 8 * N_pad * 4,
    )

    partials = pl.pallas_call(
        kernel,
        out_shape=jax.ShapeDtypeStruct((num_tiles * 8, N_pad), jnp.float32),
        grid_spec=pltpu.PrefetchScalarGridSpec(
            num_scalar_prefetch=0,
            grid=(num_tiles,),
            in_specs=[
                pl.BlockSpec((TILE_B, N_pad), lambda i: (i, 0)),   # output tile
                pl.BlockSpec((TILE_B, N_pad), lambda i: (i, 0)),   # y tile
                pl.BlockSpec((w_rows, 128), lambda i: (0, 0)),     # resident params
            ],
            out_specs=pl.BlockSpec((8, N_pad), lambda i: (i, 0)),  # lane-dense partials
        ),
        compiler_params=pltpu.CompilerParams(
            dimension_semantics=("parallel",),
            vmem_limit_bytes=32 * 1024 * 1024,
        ),
        cost_estimate=cost,
    )(out_p, y_p, w_pad)

    # Partials already carry the 1/(B*N) scale and the c * w@w term (tile 0):
    # the loss is just their sum (single tiny reduce outside the kernel).
    return jnp.sum(partials)


if __name__ == "__main__":
    key = jax.random.PRNGKey(0)
    k_out, k_y, k_w, k_b = jax.random.split(key, 4)

    # Model scores and +/-1 labels (e.g. an SVM head over a batch).
    B, N = 8, 128
    output = jax.random.normal(k_out, (B, N), dtype=jnp.float32)
    y = jnp.sign(jax.random.normal(k_y, (B, N), dtype=jnp.float32))
    y = jnp.where(y == 0, 1.0, y)  # labels strictly in {-1, +1}

    # Deterministic synthetic "model": a Linear(32 -> 1): weight (1, 32) + bias (1,)
    # parameters_to_vector(...) == concatenation of flattened params (length 33).
    hidden = 32
    w_lin = jax.random.normal(k_w, (1, hidden), dtype=jnp.float32) * 0.1
    b_lin = jax.random.normal(k_b, (1,), dtype=jnp.float32) * 0.1
    weight_vec = jnp.concatenate([w_lin.reshape(-1), b_lin.reshape(-1)])

    c = 0.5
    loss = hinge_loss(output, y, weight_vec, c=c)
    loss = jax.block_until_ready(loss)

    # Pure-JAX reference for sanity.
    ref = jnp.mean(jnp.maximum(1.0 - y * output, 0.0)) + c * jnp.dot(
        weight_vec, weight_vec
    )
    assert jnp.allclose(loss, ref, rtol=1e-5, atol=1e-5), (loss, ref)

    print("KERNEL_OK")
</pallas_src>

<mosaic_0001>
module attributes {stable_mosaic.version = 11 : i64} {
  func.func @hinge_loss_kernel(%arg0: i32, %arg1: memref<8x128xf32, #tpu.memory_space<vmem>>, %arg2: memref<8x128xf32, #tpu.memory_space<vmem>>, %arg3: memref<8x128xf32, #tpu.memory_space<vmem>>, %arg4: memref<8x128xf32, #tpu.memory_space<vmem>>) attributes {dimension_semantics = [#tpu.dimension_semantics<parallel>], iteration_bounds = array<i64: 1>, scalar_prefetch = 0 : i64, scratch_operands = 0 : i64, tpu.core_type = #tpu.core_type<tc>, window_params = [{transform_indices = @transform_0, window_bounds = array<i64: 8, 128>}, {transform_indices = @transform_1, window_bounds = array<i64: 8, 128>}, {pipeline_mode = #tpu.pipeline_mode<synchronous>, transform_indices = @transform_2, window_bounds = array<i64: 8, 128>}, {transform_indices = @transform_3, window_bounds = array<i64: 8, 128>}]} {
    %c0 = arith.constant 0 : index
    %c0_0 = arith.constant 0 : index
    %0 = vector.load %arg1[%c0, %c0_0] : memref<8x128xf32, #tpu.memory_space<vmem>>, vector<8x128xf32>
    %c0_1 = arith.constant 0 : index
    %c0_2 = arith.constant 0 : index
    %1 = vector.load %arg2[%c0_1, %c0_2] : memref<8x128xf32, #tpu.memory_space<vmem>>, vector<8x128xf32>
    %2 = arith.mulf %1, %0 : vector<8x128xf32>
    %cst = arith.constant 1.000000e+00 : f32
    %3 = vector.broadcast %cst : f32 to vector<8x128xf32>
    %4 = arith.subf %3, %2 : vector<8x128xf32>
    %cst_3 = arith.constant 0.000000e+00 : f32
    %5 = vector.broadcast %cst_3 : f32 to vector<8x128xf32>
    %6 = arith.maximumf %4, %5 : vector<8x128xf32>
    %7 = vector.shape_cast %6 : vector<8x128xf32> to vector<1x8x128xf32>
    %cst_4 = arith.constant dense<0.000000e+00> : vector<8x128xf32>
    %8 = vector.multi_reduction <add>, %7, %cst_4 [0] : vector<1x8x128xf32> to vector<8x128xf32>
    %cst_5 = arith.constant 9.765625E-4 : f32
    %9 = vector.broadcast %cst_5 : f32 to vector<8x128xf32>
    %10 = arith.mulf %8, %9 : vector<8x128xf32>
    %c0_6 = arith.constant 0 : index
    %c0_7 = arith.constant 0 : index
    %11 = vector.load %arg4[%c0_6, %c0_7] : memref<8x128xf32, #tpu.memory_space<vmem>>, vector<8x128xf32>
    tpu.vector_store %arg4[%c0_6, %c0_7], %10 {strides = array<i32>} : memref<8x128xf32, #tpu.memory_space<vmem>>, vector<8x128xf32>,
    %c0_i32 = arith.constant 0 : i32
    %12 = arith.cmpi eq, %arg0, %c0_i32 : i32
    %13 = arith.extui %12 : i1 to i32
    %c0_i32_8 = arith.constant 0 : i32
    %14 = arith.cmpi ne, %13, %c0_i32_8 : i32
    scf.if %14 {
      %c0_9 = arith.constant 0 : index
      %c0_10 = arith.constant 0 : index
      %15 = vector.load %arg3[%c0_9, %c0_10] : memref<8x128xf32, #tpu.memory_space<vmem>>, vector<8x128xf32>
      %16 = arith.mulf %15, %15 : vector<8x128xf32>
      %17 = vector.shape_cast %16 : vector<8x128xf32> to vector<1x8x128xf32>
      %cst_11 = arith.constant dense<0.000000e+00> : vector<8x128xf32>
      %18 = vector.multi_reduction <add>, %17, %cst_11 [0] : vector<1x8x128xf32> to vector<8x128xf32>
      %c0_12 = arith.constant 0 : index
      %c0_13 = arith.constant 0 : index
      %19 = vector.load %arg4[%c0_12, %c0_13] : memref<8x128xf32, #tpu.memory_space<vmem>>, vector<8x128xf32>
      %cst_14 = arith.constant 5.000000e-01 : f32
      %20 = vector.broadcast %cst_14 : f32 to vector<8x128xf32>
      %21 = arith.mulf %20, %18 : vector<8x128xf32>
      %22 = arith.addf %19, %21 : vector<8x128xf32>
      %c0_15 = arith.constant 0 : index
      %c0_16 = arith.constant 0 : index
      %23 = vector.load %arg4[%c0_15, %c0_16] : memref<8x128xf32, #tpu.memory_space<vmem>>, vector<8x128xf32>
      tpu.vector_store %arg4[%c0_15, %c0_16], %22 {strides = array<i32>} : memref<8x128xf32, #tpu.memory_space<vmem>>, vector<8x128xf32>,
    } else {
    }
    return
  }
  func.func @transform_0(%arg0: i32) -> (i32, i32) {
    %c0_i32 = arith.constant 0 : i32
    %c0_i32_0 = arith.constant 0 : i32
    return %arg0, %c0_i32 : i32, i32
  }
  func.func @transform_1(%arg0: i32) -> (i32, i32) {
    %c0_i32 = arith.constant 0 : i32
    %c0_i32_0 = arith.constant 0 : i32
    return %arg0, %c0_i32 : i32, i32
  }
  func.func @transform_2(%arg0: i32) -> (i32, i32) {
    %c0_i32 = arith.constant 0 : i32
    %c0_i32_0 = arith.constant 0 : i32
    %c0_i32_1 = arith.constant 0 : i32
    return %c0_i32, %c0_i32_0 : i32, i32
  }
  func.func @transform_3(%arg0: i32) -> (i32, i32) {
    %c0_i32 = arith.constant 0 : i32
    %c0_i32_0 = arith.constant 0 : i32
    return %arg0, %c0_i32 : i32, i32
  }
}

</mosaic_0001>

<bundles_post_ra>
// kernel: tpu_custom_call.1
= control target key start
LH: loop header
LB: loop body
LE: loop exit
PB: predicated region body
PF: predicated region fallthrough
CT: control target
= control target key end

     0   :  { %8 = vsyncpa [#allocation3], 0  ;;  %s255_s0 = inlined_call_operand.hbm [shape: f32[8,128], index: 0, kind: input, shape index: {}]   ;;  %s256_s1 = inlined_call_operand.hbm [shape: f32[8,128], index: 1, kind: input, shape index: {}]   ;;  %s257_s2 = inlined_call_operand.hbm [shape: f32[8,128], index: 2, kind: input, shape index: {}]   ;;  %s258_s3 = inlined_call_operand.hbm [shape: f32[8,128], index: 3, kind: output, shape index: {}]  }
   0x1   :  { %9 = vsyncpa [#allocation6], 0 }
   0x2   :  { %10 = vsyncpa [#allocation4], 0  ;;  %s183_s12 = smov [#allocation5]   ;;  %s184_s14 = smov [#allocation2]  }
   0x3   :  { %s27_s13 = sshll.u32 %s183_s12, 4  ;;  %s17_s15 = sshll.u32 %s184_s14, 4  ;;  %s28_s13 = int_to_ptr.vmem [resolvable:$true] %s27_s13  ;;  %s18_s15 = int_to_ptr.vmem [resolvable:$true] %s17_s15 }
   0x4   :  { %s89_s18 = scalar_lea.hbm %s256_s1, 128 }
   0x5   :  { %p90_p0 = scmp.ne.s32.totalorder %s256_s1, %s89_s18  ;;  %p93_p1 = scmp.lt.u32.totalorder %s89_s18, %s256_s1 }
   0x7   :  { %p95_p2 = pnand %p93_p1, %p90_p0 }
   0x9   :  { %98 = shalt.err (!%p95_p2)
}
   0xa   :  { %s99_s23 = scalar_lea.vmem %s28_s13, 128  ;;  %p104_p4 = scmp.lt.s32.totalorder %s28_s13, %s28_s13 }
   0xb   :  { %p100_p3 = scmp.ne.s32.totalorder %s28_s13, %s99_s23  ;;  %p105_p5 = scmp.lt.s32.totalorder %s99_s23, %s99_s23 }
   0xd   :  { %p106_p6 = por %p105_p5, %p104_p4 }
   0xf   :  { %p107_p7 = pnand %p106_p6, %p100_p3 }
  0x11   :  { %110 = shalt.err (!%p107_p7)
}
  0x12   :  { %30 = dma.hbm_to_vmem [thread:$0]  %s256_s1, 128, %s28_s13, [#allocation6]  }
  0x13   :  { %s111_s28 = scalar_lea.hbm %s255_s0, 128 }
  0x14   :  { %p112_p8 = scmp.ne.s32.totalorder %s255_s0, %s111_s28  ;;  %p115_p9 = scmp.lt.u32.totalorder %s111_s28, %s255_s0 }
  0x16   :  { %p117_p10 = pnand %p115_p9, %p112_p8 }
  0x18   :  { %120 = shalt.err (!%p117_p10)
}
  0x19   :  { %s121_s6 = scalar_lea.vmem %s18_s15, 128  ;;  %p126_p12 = scmp.lt.s32.totalorder %s18_s15, %s18_s15 }
  0x1a   :  { %p122_p11 = scmp.ne.s32.totalorder %s18_s15, %s121_s6  ;;  %p127_p13 = scmp.lt.s32.totalorder %s121_s6, %s121_s6 }
  0x1c   :  { %p128_p0 = por %p127_p13, %p126_p12 }
  0x1e   :  { %p129_p1 = pnand %p128_p0, %p122_p11 }
  0x20   :  { %132 = shalt.err (!%p129_p1)
}
  0x21   :  { %20 = dma.hbm_to_vmem [thread:$0]  %s255_s0, 128, %s18_s15, [#allocation3]  }
  0x22   :  { %s185_s8 = smov [#allocation7]   ;;  %s133_s12 = scalar_lea.hbm %s257_s2, 128 }
  0x23   :  { %s37_s9 = sshll.u32 %s185_s8, 4  ;;  %p134_p2 = scmp.ne.s32.totalorder %s257_s2, %s133_s12  ;;  %s38_s9 = int_to_ptr.vmem [resolvable:$true] %s37_s9 }
  0x24   :  { %p137_p3 = scmp.lt.u32.totalorder %s133_s12, %s257_s2 }
  0x26   :  { %p139_p4 = pnand %p137_p3, %p134_p2 }
  0x28   :  { %142 = shalt.err (!%p139_p4)
}
  0x29   :  { %s143_s18 = scalar_lea.vmem %s38_s9, 128  ;;  %p148_p6 = scmp.lt.s32.totalorder %s38_s9, %s38_s9 }
  0x2a   :  { %p144_p5 = scmp.ne.s32.totalorder %s38_s9, %s143_s18  ;;  %p149_p7 = scmp.lt.s32.totalorder %s143_s18, %s143_s18 }
  0x2c   :  { %p150_p8 = por %p149_p7, %p148_p6 }
  0x2e   :  { %p151_p9 = pnand %p150_p8, %p144_p5 }
  0x30   :  { %154 = shalt.err (!%p151_p9)
}
  0x31   :  { %40 = dma.hbm_to_vmem [thread:$0]  %s257_s2, 128, %s38_s9, [#allocation6]  }
  0x32   :  { %177 = dma.done.wait [#allocation3], 128  }
  0x33   :  { %178 = vsyncadd [#allocation3], 4294967168 }
  0x34   :  { %179 = dma.done.wait [#allocation6], 256  }
  0x35   :  { %180 = vsyncadd [#allocation6], 4294967040  ;;  %v50_v0 = vld [vmem:[#allocation2] sm:$0xff]  ;;  %v51_v1 = vld [vmem:[#allocation5] sm:$0xff]  ;;  %s186_s19 = smov [#allocation8]  }
  0x36   :  { %v62_v2 = vld [vmem:[#allocation7] sm:$0xff]  ;;  %v52_v3 = vmul.f32 %v51_v1, %v50_v0  ;;  %s75_s20 = sshll.u32 %s186_s19, 4  ;;  %s76_s20 = int_to_ptr.vmem [resolvable:$true] %s75_s20 }
  0x37   :  { %v63_v4 = vmul.f32 %v62_v2, %v62_v2  ;;  %s155_s21 = scalar_lea.vmem %s76_s20, 128  ;;  %p160_p11 = scmp.lt.s32.totalorder %s76_s20, %s76_s20 }
  0x38   :  { %v53_v5 = vsub.f32 1.0, %v52_v3  ;;  %p156_p10 = scmp.ne.s32.totalorder %s76_s20, %s155_s21  ;;  %p161_p12 = scmp.lt.s32.totalorder %s155_s21, %s155_s21 }
  0x39   :  { %v66_v7 = vmul.f32 0.5, %v63_v4 }
  0x3a   :  { %v54_v6 = vmax.f32 %v53_v5, 0.0  ;;  %p162_p13 = por %p161_p12, %p160_p11 }
  0x3c   :  { %v56_v8 = vmul.f32 0.0009765625, %v54_v6  ;;  %p163_p0 = pnand %p162_p13, %p156_p10 }
  0x3e   :  { %v67_v9 = vadd.f32 %v66_v7, %v56_v8 }
  0x40   :  { %68 = vst [vmem:[#allocation8] sm:$0xff] %v67_v9 }
  0x41   :  { %166 = shalt.err (!%p163_p0)
}
  0x42   :  { %s167_s23 = scalar_lea.hbm %s258_s3, 128 }
  0x43   :  { %p168_p1 = scmp.ne.s32.totalorder %s258_s3, %s167_s23  ;;  %p171_p2 = scmp.lt.u32.totalorder %s167_s23, %s258_s3 }
  0x45   :  { %p173_p3 = pnand %p171_p2, %p168_p1 }
  0x47   :  { %176 = shalt.err (!%p173_p3)
}
  0x48   :  { %78 = dma.vmem_to_hbm [thread:$0]  %s76_s20, 128, %s258_s3, [#allocation4]  }
  0x49   :  { %181 = dma.done.wait [#allocation4], 128  }
  0x4a   :  { %182 = vsyncadd [#allocation4], 4294967168 }
  0x4b   :  { %82 = vsyncpa [#allocation3], 1 }
  0x4c   :  { %83 = vsyncpa [#allocation6], 1 }
  0x4d   :  { %84 = vsyncpa [#allocation4], 1 }

</bundles_post_ra>
